<compile_context>
chip_gen: v7x
topology: tpu7x:2x2x1
jax: 0.10.0
libtpu: 0.0.40
codegen_flags: <defaults>
</compile_context>

<pallas_src>
import math
import functools

import jax
import jax.numpy as jnp
from jax import lax
from jax.experimental import pallas as pl
from jax.experimental.pallas import tpu as pltpu


def _round_up(v, m):
    return ((v + m - 1) // m) * m


def _cos_logits_kernel(x_ref, pt_ref, o_ref):
    """One (TILE_N, D) tile of features against all (C, D) prototypes.

    x_ref  : VMEM (TILE_N, D_pad) f32 features
    pt_ref : VMEM (C_pad, D_pad)  temp * normalize(proto)  (matmul dtype)
    o_ref  : VMEM (TILE_N, C_pad) f32 logits
    """
    x = x_ref[...].astype(jnp.float32)

    # F.normalize(..., eps=1e-12): v / max(||v||, eps)  ==  v * rsqrt(max(||v||^2, eps^2))
    sumsq = jnp.sum(x * x, axis=-1, keepdims=True)
    inv_norm = lax.rsqrt(jnp.maximum(sumsq, 1e-24))
    xn = (x * inv_norm).astype(pt_ref.dtype)

    # Contract both operands on D: (TILE_N, D) x (C, D) -> (TILE_N, C), no transpose.
    logits = lax.dot_general(
        xn,
        pt_ref[...],
        dimension_numbers=(((1,), (1,)), ((), ())),
        preferred_element_type=jnp.float32,
    )
    o_ref[...] = logits.astype(o_ref.dtype)


def nn_classifier_forward(x, proto, temp, *, training,
                          matmul_dtype=jnp.bfloat16, tile_n=256):
    """Pallas-backed equivalent of NNClassifier.forward with metric='cos'."""
    n, d = x.shape
    c, d2 = proto.shape
    assert d == d2

    eff_temp = temp if training else 1.0

    # Hoisted: normalize prototypes once and fold the temperature in (C*D op).
    p32 = proto.astype(jnp.float32)
    p_sumsq = jnp.sum(p32 * p32, axis=-1, keepdims=True)
    pn = p32 * lax.rsqrt(jnp.maximum(p_sumsq, 1e-24))
    pt = (pn * jnp.float32(eff_temp)).astype(matmul_dtype)

    # Pad to TPU-friendly shapes. Zero padding is inert for norms and dots.
    d_pad = _round_up(d, 128)
    c_pad = _round_up(c, 128)          # lane-dense output (no masked stores)
    tile_n = max(8, min(tile_n, _round_up(n, 8)))
    n_pad = _round_up(n, tile_n)

    xp = x.astype(jnp.float32)
    if (n_pad, d_pad) != (n, d):
        xp = jnp.pad(xp, ((0, n_pad - n), (0, d_pad - d)))
    if (c_pad, d_pad) != (c, d):
        pt = jnp.pad(pt, ((0, c_pad - c), (0, d_pad - d)))

    # VMEM budget: double-buffered x / out tiles + resident prototypes.
    itemsize = jnp.dtype(matmul_dtype).itemsize
    vmem_est = (2 * tile_n * d_pad * 4
                + 2 * c_pad * d_pad * itemsize
                + 2 * tile_n * c_pad * 4)
    vmem_limit = int(min(max(2 * vmem_est, 32 * 1024 * 1024), 64 * 1024 * 1024))

    grid = (n_pad // tile_n,)

    out = pl.pallas_call(
        _cos_logits_kernel,
        out_shape=jax.ShapeDtypeStruct((n_pad, c_pad), jnp.float32),
        grid=grid,
        in_specs=[
            pl.BlockSpec((tile_n, d_pad), lambda i: (i, 0)),   # x tile, pipelined over N
            pl.BlockSpec((c_pad, d_pad), lambda i: (0, 0)),    # prototypes, constant block
        ],
        out_specs=pl.BlockSpec((tile_n, c_pad), lambda i: (i, 0)),
        compiler_params=pltpu.CompilerParams(
            dimension_semantics=("parallel",),                 # megacore / 2-TC sharding
            vmem_limit_bytes=vmem_limit,
        ),
    )(xp, pt)

    return out[:n, :c]


def _reference_logits(x, proto, temp, training):
    xn = x / jnp.maximum(jnp.linalg.norm(x, axis=-1, keepdims=True), 1e-12)
    pn = proto / jnp.maximum(jnp.linalg.norm(proto, axis=-1, keepdims=True), 1e-12)
    return (xn @ pn.T) * (temp if training else 1.0)


if __name__ == "__main__":
    # Small shapes consistent with the module; deliberately not multiples of
    # 8/128 to exercise the padding paths.
    N, in_dim, class_num = 50, 96, 10
    temp = 10.0  # nn.Parameter(torch.tensor(10.0)) for metric='cos'

    key = jax.random.PRNGKey(0)
    kx, kp = jax.random.split(key)

    # Deterministic init of proto matching kaiming_uniform_(a=sqrt(5)):
    # bound = sqrt(6 / ((1 + a^2) * fan_in)) = sqrt(1 / in_dim)
    bound = math.sqrt(1.0 / in_dim)
    proto = jax.random.uniform(
        kp, (class_num, in_dim), dtype=jnp.float32, minval=-bound, maxval=bound
    )
    x = jax.random.normal(kx, (N, in_dim), dtype=jnp.float32)

    ref_train = _reference_logits(x, proto, temp, training=True)
    ref_eval = _reference_logits(x, proto, temp, training=False)

    # 1) Exact path: f32 MXU feed, multi-tile grid over N (tile_n=16 -> grid=(4,)).
    fwd_f32 = jax.jit(functools.partial(
        nn_classifier_forward, training=True,
        matmul_dtype=jnp.float32, tile_n=16))
    out_f32 = fwd_f32(x, proto, temp)
    jax.block_until_ready(out_f32)
    assert out_f32.shape == (N, class_num)
    assert jnp.allclose(out_f32, ref_train, atol=1e-4, rtol=1e-4)

    # 2) Fast path (default): bf16 MXU feed, f32 accumulation.
    fwd_bf16 = jax.jit(functools.partial(nn_classifier_forward, training=True))
    out_bf16 = fwd_bf16(x, proto, temp)
    jax.block_until_ready(out_bf16)
    assert out_bf16.shape == (N, class_num)
    assert jnp.allclose(out_bf16, ref_train, atol=5e-2, rtol=5e-2)

    # 3) Eval mode: temperature gated to 1.0.
    fwd_eval = jax.jit(functools.partial(
        nn_classifier_forward, training=False, matmul_dtype=jnp.float32))
    out_eval = fwd_eval(x, proto, temp)
    jax.block_until_ready(out_eval)
    assert jnp.allclose(out_eval, ref_eval, atol=1e-4, rtol=1e-4)

    print("KERNEL_OK")
</pallas_src>

<mosaic_0001>
module attributes {stable_mosaic.version = 11 : i64} {
  func.func @_cos_logits_kernel(%arg0: i32, %arg1: memref<16x128xf32, #tpu.memory_space<vmem>>, %arg2: memref<128x128xf32, #tpu.memory_space<vmem>>, %arg3: memref<16x128xf32, #tpu.memory_space<vmem>>) attributes {dimension_semantics = [#tpu.dimension_semantics<parallel>], iteration_bounds = array<i64: 4>, scalar_prefetch = 0 : i64, scratch_operands = 0 : i64, tpu.core_type = #tpu.core_type<tc>, window_params = [{transform_indices = @transform_0, window_bounds = array<i64: 16, 128>}, {pipeline_mode = #tpu.pipeline_mode<synchronous>, transform_indices = @transform_1, window_bounds = array<i64: 128, 128>}, {transform_indices = @transform_2, window_bounds = array<i64: 16, 128>}]} {
    %c0 = arith.constant 0 : index
    %c0_0 = arith.constant 0 : index
    %0 = vector.load %arg1[%c0, %c0_0] : memref<16x128xf32, #tpu.memory_space<vmem>>, vector<16x128xf32>
    %1 = arith.mulf %0, %0 : vector<16x128xf32>
    %cst = arith.constant dense<0.000000e+00> : vector<16xf32>
    %2 = vector.multi_reduction <add>, %1, %cst [1] : vector<16x128xf32> to vector<16xf32>
    %3 = vector.shape_cast %2 : vector<16xf32> to vector<16x1xf32>
    %cst_1 = arith.constant 1.000000e-24 : f32
    %4 = vector.broadcast %cst_1 : f32 to vector<16x1xf32>
    %5 = arith.maximumf %3, %4 : vector<16x1xf32>
    %6 = math.rsqrt %5 : vector<16x1xf32>
    %7 = vector.broadcast %6 : vector<16x1xf32> to vector<16x128xf32>
    %8 = arith.mulf %0, %7 : vector<16x128xf32>
    %c0_2 = arith.constant 0 : index
    %c0_3 = arith.constant 0 : index
    %9 = vector.load %arg2[%c0_2, %c0_3] : memref<128x128xf32, #tpu.memory_space<vmem>>, vector<128x128xf32>
    %cst_4 = arith.constant dense<0.000000e+00> : vector<16x128xf32>
    %10 = tpu.matmul %8, %9, %cst_4 {dimension_numbers = #tpu.dot_dimension_numbers<[1], [1], [0], [0], [0, 0, 1, 0], [], []>} : vector<16x128xf32>, vector<128x128xf32>, vector<16x128xf32> -> vector<16x128xf32>
    %c0_5 = arith.constant 0 : index
    %c0_6 = arith.constant 0 : index
    %11 = vector.load %arg3[%c0_5, %c0_6] : memref<16x128xf32, #tpu.memory_space<vmem>>, vector<16x128xf32>
    tpu.vector_store %arg3[%c0_5, %c0_6], %10 {strides = array<i32>} : memref<16x128xf32, #tpu.memory_space<vmem>>, vector<16x128xf32>,
    return
  }
  func.func @transform_0(%arg0: i32) -> (i32, i32) {
    %c0_i32 = arith.constant 0 : i32
    %c0_i32_0 = arith.constant 0 : i32
    return %arg0, %c0_i32 : i32, i32
  }
  func.func @transform_1(%arg0: i32) -> (i32, i32) {
    %c0_i32 = arith.constant 0 : i32
    %c0_i32_0 = arith.constant 0 : i32
    %c0_i32_1 = arith.constant 0 : i32
    return %c0_i32, %c0_i32_0 : i32, i32
  }
  func.func @transform_2(%arg0: i32) -> (i32, i32) {
    %c0_i32 = arith.constant 0 : i32
    %c0_i32_0 = arith.constant 0 : i32
    return %arg0, %c0_i32 : i32, i32
  }
}

</mosaic_0001>

<bundles_post_ra>
// kernel: nn_classifier_forward.1
= control target key start
LH: loop header
LB: loop body
LE: loop exit
PB: predicated region body
PF: predicated region fallthrough
CT: control target
= control target key end

     0   :  { %s441_s9 = smov 0   ;;  %s513_s0 = inlined_call_operand.vmem [shape: f32[64,128], index: 0, kind: input, shape index: {}]   ;;  %s514_s1 = inlined_call_operand.vmem [shape: f32[128,128], index: 1, kind: input, shape index: {}]   ;;  %s515_s2 = inlined_call_operand.vmem [shape: f32[64,128], index: 2, kind: output, shape index: {}]  }
   0x1 LB: > { %s310_s10 = sadd.s32 4294967295, %s424_s9   ;;  %p314_p0 = scmp.ge.s32.totalorder %s424_s9, 1  ;;  %s424_s9 = sphi %s441_s9, %s12_s9  }
   0x2   : > { %p113_p1 = scmp.lt.s32.totalorder %s424_s9, 5 }
   0x4   : > { %p114_p2 = pnand %p314_p0, %p113_p1 }
   0x5   : > { %s315_s11 = sshll.u32 (!%p114_p2), %s310_s10, 1  ;;  %v161_v0 = vld [vmem:[%s514_s1] sm:$0xff] (!%p114_p2)  ;;  %v162_v1 = vld [vmem:[%s514_s1 + $0x8] sm:$0xff] (!%p114_p2)  ;;  %v163_v2 = vld [vmem:[%s514_s1 + $0x10] sm:$0xff] (!%p114_p2) }
   0x6   : > { %117 = sbr.rel (%p114_p2) target bundleno = 394 (0x18a), region = 28  ;;  %p136_p3 = scmp.lt.s32.totalorder (!%p114_p2), %s315_s11, 7  ;;  %v374_v3 = vpack.c.bf16 (!%p114_p2), %v162_v1, %v161_v0  ;;  %v164_v4 = vld [vmem:[%s514_s1 + $0x18] sm:$0xff] (!%p114_p2)  ;;  %v165_v6 = vld [vmem:[%s514_s1 + $0x20] sm:$0xff] (!%p114_p2)  ;;  %v166_v7 = vld [vmem:[%s514_s1 + $0x28] sm:$0xff] (!%p114_p2) }
   0x7   : > { %v378_v5 = vpack.c.bf16 (!%p114_p2), %v164_v4, %v163_v2  ;;  %v382_v11 = vpack.c.bf16 (!%p114_p2), %v166_v7, %v165_v6  ;;  %v167_v13 = vld [vmem:[%s514_s1 + $0x30] sm:$0xff] (!%p114_p2)  ;;  %v168_v14 = vld [vmem:[%s514_s1 + $0x38] sm:$0xff] (!%p114_p2)  ;;  %v169_v16 = vld [vmem:[%s514_s1 + $0x40] sm:$0xff] (!%p114_p2) }
   0x8   : > { %375 = vmatprep.subr.bf16.mxu0 (!%p114_p2), %v374_v3  ;;  %v386_v15 = vpack.c.bf16 (!%p114_p2), %v168_v14, %v167_v13  ;;  %v170_v17 = vld [vmem:[%s514_s1 + $0x48] sm:$0xff] (!%p114_p2)  ;;  %v171_v19 = vld [vmem:[%s514_s1 + $0x50] sm:$0xff] (!%p114_p2)  ;;  %v172_v20 = vld [vmem:[%s514_s1 + $0x58] sm:$0xff] (!%p114_p2) }
   0x9   : > { %377 = vmatpush3.bf16.xpose.msra.mxu0 (!%p114_p2), %v374_v3  ;;  %v390_v18 = vpack.c.bf16 (!%p114_p2), %v170_v17, %v169_v16  ;;  %v394_v21 = vpack.c.bf16 (!%p114_p2), %v172_v20, %v171_v19  ;;  %v173_v22 = vld [vmem:[%s514_s1 + $0x60] sm:$0xff] (!%p114_p2)  ;;  %v174_v23 = vld [vmem:[%s514_s1 + $0x68] sm:$0xff] (!%p114_p2)  ;;  %v175_v25 = vld [vmem:[%s514_s1 + $0x70] sm:$0xff] (!%p114_p2) }
   0xa   : > { %379 = vmatprep.subr.bf16.mxu0 (!%p114_p2), %v378_v5  ;;  %v398_v24 = vpack.c.bf16 (!%p114_p2), %v174_v23, %v173_v22  ;;  %v176_v26 = vld [vmem:[%s514_s1 + $0x78] sm:$0xff] (!%p114_p2) }
   0xb   : > { %v402_v27 = vpack.c.bf16 (!%p114_p2), %v176_v26, %v175_v25 }
   0xd   : > { %s517_s11 = smov (!%p136_p3, %s315_s11), 7 }
   0xe   : > { %s316_s20 = sshll.u32 %s517_s11, 3 }
   0xf   : > { %s139_s23 = scalar_lea.vmem %s513_s0, %s316_s20  ;;  %s145_s25 = scalar_lea.vmem %s515_s2, %s316_s20 }
  0x10   : > { %v147_v8 = vld [vmem:[%s139_s23] sm:$0xff]  ;;  %v148_v9 = vld [vmem:[%s139_s23 + $0x8] sm:$0xff] }
  0x11   : > { %v149_v10 = vmul.f32 %v147_v8, %v147_v8  ;;  %v150_v12 = vmul.f32 %v148_v9, %v148_v9  ;;  %381 = vmatpush3.bf16.xpose.msra.mxu0 %v378_v5 }
  0x12   : > { %383 = vmatprep.subr.bf16.mxu0 %v382_v11 }
  0x13   : > { %151 = vadd.xlane.f32.xlu0 %v149_v10 }
  0x17   : > { %153 = vadd.xlane.f32.xlu0 %v150_v12 }
  0x19   : > { %385 = vmatpush3.bf16.xpose.msra.mxu0 %v382_v11 }
  0x1a   : > { %387 = vmatprep.subr.bf16.mxu0 %v386_v15 }
  0x21   : > { %389 = vmatpush3.bf16.xpose.msra.mxu0 %v386_v15 }
  0x22   : > { %391 = vmatprep.subr.bf16.mxu0 %v390_v18 }
  0x29   : > { %393 = vmatpush3.bf16.xpose.msra.mxu0 %v390_v18 }
  0x2a   : > { %395 = vmatprep.subr.bf16.mxu0 %v394_v21 }
  0x31   : > { %397 = vmatpush3.bf16.xpose.msra.mxu0 %v394_v21 }
  0x32   : > { %399 = vmatprep.subr.bf16.mxu0 %v398_v24 }
  0x39   : > { %401 = vmatpush3.bf16.xpose.msra.mxu0 %v398_v24 }
  0x3a   : > { %403 = vmatprep.subr.bf16.mxu0 %v402_v27 }
  0x41   : > { %405 = vmatpush3.bf16.xpose.msra.mxu0 %v402_v27 }
  0xa0   : > { %v152_v28 = vpop.xlane.xlu0 %151 }
  0xa1   : > { %v155_v29 = vmax.f32 %v152_v28, 1e-24 }
  0xa3   : > { %414 = vrsqrt.f32 %v155_v29 }
  0xa4   : > { %v154_v30 = vpop.xlane.xlu0 %153 }
  0xa5   : > { %v156_v31 = vmax.f32 %v154_v30, 1e-24 }
  0xa7   : > { %416 = vrsqrt.f32 %v156_v31 }
  0xad   : > { %v415_v32 = vpop.eup %414 }
  0xae   : > { %v159_v33 = vmul.f32 %v415_v32, %v147_v8 }
  0xb0   : > { %371 = vmatprep.mubr.f32.mxu0 %v159_v33 }
  0xb1   : > { %v417_v34 = vpop.eup %416 }
  0xb2   : > { %v160_v35 = vmul.f32 %v417_v34, %v148_v9 }
  0xb4   : > { %372 = vmatmul.mubr.f32.vlgmr.msra.gmra.mrb[0].mxu0 %v160_v35 }
 0x187   : > { %v373_v36 = vpop.f32.mrb[0].mxu0 }
 0x188   : > { %v243_v37 = vpop.f32.mrb[1].mxu0  ;;  %253 = vst [vmem:[%s145_s25 + $0x8] sm:$0xff] %v373_v36 }
 0x189   : > { %252 = vst [vmem:[%s145_s25] sm:$0xff] %v243_v37 }
 0x18a PF: > { %s12_s9 = sadd.s32 1, %s424_s9  }
 0x18b   : > { %p9_p4 = scmp.ge.s32.totalorder %s12_s9, 6  }
 0x18d   :  { %11 = sbr.rel (!%p9_p4) target bundleno = 1 (0x1), region = 58 }

</bundles_post_ra>
